<compile_context>
chip_gen: v7x
topology: tpu7x:2x2x1
jax: 0.10.0
libtpu: 0.0.40
codegen_flags: <defaults>
</compile_context>

<pallas_src>
import functools

import jax
import jax.numpy as jnp
from jax.experimental import pallas as pl
from jax.experimental.pallas import tpu as pltpu


def _vmem_budget_bytes():
    """Per-chip VMEM budget (leave headroom for compiler scratch / sems)."""
    try:
        cap = pltpu.get_tpu_info().vmem_capacity_bytes
    except Exception:
        cap = 64 * 1024 * 1024          # conservative: v7x per-TensorCore VMEM
    return max(int(cap * 3 // 4), 16 * 1024 * 1024)


def _stable_sigmoid(x):
    # exp of a non-positive argument only -> no inf intermediates; exp lands
    # on the EUP slot, select on the VPU.
    e = jnp.exp(-jnp.abs(x))
    return jnp.where(x >= 0, 1.0 / (1.0 + e), e / (1.0 + e))


def _se_mlp(m, w1t, b1, w2, b2):
    """Squeeze-excitation MLP in column orientation.

    m   : (C, 1)   per-channel spatial mean (f32)
    w1t : (C, Hd)  fc1 weight transposed from PyTorch (Hd, C)
    b1  : (1, Hd)
    w2  : (C, Hd)  fc2 weight in PyTorch layout (C, Hd)
    b2  : (C, 1)
    returns (C, 1) f32 sigmoid gate.
    """
    h = jnp.sum(w1t * m, axis=0, keepdims=True) + b1    # (1, Hd)
    h = jnp.maximum(h, 0.0)                             # ReLU
    s = jnp.sum(w2 * h, axis=1, keepdims=True) + b2     # (C, 1)
    return _stable_sigmoid(s)


def _attn_fused_kernel(x_ref, w1t_ref, b1_ref, w2_ref, b2_ref, o_ref, *, inv_hw):
    """One image per grid step: pool + MLP + scale; single read/write of x.

    No full f32 copy of x is held live: the cast is fused into the reduction
    and the final scale runs in x's native dtype (gate cast down once).
    """
    x = x_ref[0]                                                    # (C, HW)
    m = jnp.sum(x.astype(jnp.float32), axis=1, keepdims=True) * inv_hw
    gate = _se_mlp(m, w1t_ref[...], b1_ref[...], w2_ref[...], b2_ref[...])
    o_ref[0] = (x * gate.astype(x_ref.dtype)).astype(o_ref.dtype)


def _attn_pool_kernel(x_ref, w1t_ref, b1_ref, w2_ref, b2_ref, gate_ref,
                      acc_ref, *, inv_hw):
    """Tiled global-average-pool + MLP. grid = (N, HW_tiles), tiles 'arbitrary'."""
    t = pl.program_id(1)

    @pl.when(t == 0)
    def _init():
        acc_ref[...] = jnp.zeros_like(acc_ref)

    acc_ref[...] += jnp.sum(x_ref[0].astype(jnp.float32), axis=1, keepdims=True)

    @pl.when(t == pl.num_programs(1) - 1)
    def _finish():
        m = acc_ref[...] * inv_hw                                   # (C, 1)
        gate_ref[0] = _se_mlp(m, w1t_ref[...], b1_ref[...], w2_ref[...],
                              b2_ref[...]).astype(gate_ref.dtype)


def _attn_apply_kernel(x_ref, gate_ref, o_ref):
    """out = x * gate, tiled over (N, HW_tiles); both axes parallel.

    Multiply runs in x's native dtype (gate cast down once) — no f32 temp.
    """
    g = gate_ref[...].astype(x_ref.dtype)                           # (1, C, 1)
    o_ref[...] = (x_ref[...] * g).astype(o_ref.dtype)


def _pick_hw_tile(hw, channels, itemsize, target_bytes):
    """Byte-targeted lane tile: largest 128-multiple divisor of hw under the
    target, with a bounded-divisor fallback (never defaults to whole image
    unless hw itself is small)."""
    target = max(128, min(hw, target_bytes // max(channels * itemsize, 1)))
    start = (target // 128) * 128
    for t in range(start, 0, -128):
        if hw % t == 0:
            return t
    # hw has no 128-multiple divisor <= target: largest plain divisor instead
    # (keeps blocks bounded without tail masking / padding DMAs).
    for t in range(min(target, hw), 0, -1):
        if hw % t == 0:
            return t
    return hw


def attention_forward(x_nchw, fc1_w, fc1_b, fc2_w, fc2_b, *,
                      force_tiled=False, hw_tile=None, donate_x=False):
    """Forward pass of the PyTorch Attention module for NCHW input.

    fc1_w: (C//8, C), fc1_b: (C//8,)   (PyTorch nn.Linear layouts)
    fc2_w: (C, C//8), fc2_b: (C,)
    donate_x: alias x's buffer to the output (use only if x is dead afterwards).
    """
    N, C, H, W = x_nchw.shape
    HW = H * W
    Hd = fc1_w.shape[0]
    inv_hw = 1.0 / float(HW)

    # Free, contiguous reshape: spatial on the lane axis, channels on sublanes.
    xf = x_nchw.reshape(N, C, HW)
    itemsize = xf.dtype.itemsize

    w1t = jnp.transpose(fc1_w).astype(jnp.float32)      # (C, Hd)
    b1 = fc1_b.reshape(1, Hd).astype(jnp.float32)
    w2 = fc2_w.astype(jnp.float32)                      # (C, Hd)
    b2 = fc2_b.reshape(C, 1).astype(jnp.float32)

    weight_specs = [
        pl.BlockSpec((C, Hd), lambda *idx: (0, 0)),
        pl.BlockSpec((1, Hd), lambda *idx: (0, 0)),
        pl.BlockSpec((C, Hd), lambda *idx: (0, 0)),
        pl.BlockSpec((C, 1), lambda *idx: (0, 0)),
    ]
    weights_bytes = 4 * (w1t.size + b1.size + w2.size + b2.size)

    # ---- VMEM-budget-aware path selection ---------------------------------
    budget = _vmem_budget_bytes()
    image_bytes = C * HW * itemsize
    # Fused-path live VMEM ~= in + out, each double-buffered (4x image), plus
    # an f32 reduction temp for sub-32-bit inputs, plus weights + headroom.
    f32_temp = C * HW * 4 if itemsize < 4 else 0
    fused_need = 4 * image_bytes + f32_temp + weights_bytes + (1 << 20)
    alias = {0: 0} if donate_x else {}

    if not force_tiled and fused_need <= budget:
        kernel = functools.partial(_attn_fused_kernel, inv_hw=inv_hw)
        out = pl.pallas_call(
            kernel,
            out_shape=jax.ShapeDtypeStruct((N, C, HW), x_nchw.dtype),
            grid_spec=pltpu.PrefetchScalarGridSpec(
                num_scalar_prefetch=0,
                grid=(N,),
                in_specs=[pl.BlockSpec((1, C, HW), lambda n: (n, 0, 0))]
                         + weight_specs,
                out_specs=pl.BlockSpec((1, C, HW), lambda n: (n, 0, 0)),
            ),
            compiler_params=pltpu.CompilerParams(
                dimension_semantics=("parallel",),
                vmem_limit_bytes=budget),
            input_output_aliases=alias,
        )(xf, w1t, b1, w2, b2)
        return out.reshape(N, C, H, W)

    # ---- Tiled two-pass path (bounded VMEM, pipelined, megacore-friendly) --
    # Byte-targeted tiles: ~2 MiB per block (capped by budget), 128-multiple
    # lane width when hw allows it.
    target_bytes = min(2 * 1024 * 1024, budget // 8)
    if hw_tile is not None and HW % hw_tile == 0:
        tile = hw_tile
    else:
        tile = _pick_hw_tile(HW, C, itemsize, target_bytes)
    num_tiles = HW // tile

    pool_kernel = functools.partial(_attn_pool_kernel, inv_hw=inv_hw)
    gate = pl.pallas_call(
        pool_kernel,
        out_shape=jax.ShapeDtypeStruct((N, C, 1), jnp.float32),
        grid_spec=pltpu.PrefetchScalarGridSpec(
            num_scalar_prefetch=0,
            grid=(N, num_tiles),
            in_specs=[pl.BlockSpec((1, C, tile), lambda n, t: (n, 0, t))]
                     + weight_specs,
            out_specs=pl.BlockSpec((1, C, 1), lambda n, t: (n, 0, 0)),
            scratch_shapes=[pltpu.VMEM((C, 1), jnp.float32)],
        ),
        compiler_params=pltpu.CompilerParams(
            dimension_semantics=("parallel", "arbitrary"),
            vmem_limit_bytes=budget),
    )(xf, w1t, b1, w2, b2)

    out = pl.pallas_call(
        _attn_apply_kernel,
        out_shape=jax.ShapeDtypeStruct((N, C, HW), x_nchw.dtype),
        grid_spec=pltpu.PrefetchScalarGridSpec(
            num_scalar_prefetch=0,
            grid=(N, num_tiles),
            in_specs=[
                pl.BlockSpec((1, C, tile), lambda n, t: (n, 0, t)),
                pl.BlockSpec((1, C, 1), lambda n, t: (n, 0, 0)),
            ],
            out_specs=pl.BlockSpec((1, C, tile), lambda n, t: (n, 0, t)),
        ),
        compiler_params=pltpu.CompilerParams(
            dimension_semantics=("parallel", "parallel"),
            vmem_limit_bytes=budget),
        input_output_aliases=alias,
    )(xf, gate)
    return out.reshape(N, C, H, W)


def _reference(x, fc1_w, fc1_b, fc2_w, fc2_b):
    """Pure-JAX equivalent of Attention.forward (PyTorch semantics)."""
    m = jnp.mean(x, axis=(2, 3))                               # (N, C)
    h = jax.nn.relu(m @ fc1_w.T + fc1_b)                       # (N, C//8)
    s = jax.nn.sigmoid(h @ fc2_w.T + fc2_b)                    # (N, C)
    return x * s[:, :, None, None]


if __name__ == "__main__":
    # Small shapes consistent with the module: in_channels must be >= 8 so
    # that in_channels // 8 >= 1.
    N, C, H, W = 2, 32, 16, 16
    Hd = C // 8

    key = jax.random.PRNGKey(0)
    k1, k2, k3 = jax.random.split(key, 3)

    # kaiming_normal(mode='fan_out', nonlinearity='relu') for nn.Linear:
    # std = sqrt(2 / out_features); biases initialized to 0.
    fc1_w = jax.random.normal(k1, (Hd, C), jnp.float32) * jnp.sqrt(2.0 / Hd)
    fc1_b = jnp.zeros((Hd,), jnp.float32)
    fc2_w = jax.random.normal(k2, (C, Hd), jnp.float32) * jnp.sqrt(2.0 / C)
    fc2_b = jnp.zeros((C,), jnp.float32)

    x = jax.random.normal(k3, (N, C, H, W), jnp.float32)

    ref = _reference(x, fc1_w, fc1_b, fc2_w, fc2_b)

    # Fused single-pass path (small image -> fits the VMEM budget).
    out_fused = attention_forward(x, fc1_w, fc1_b, fc2_w, fc2_b)
    out_fused = jax.block_until_ready(out_fused)
    assert out_fused.shape == (N, C, H, W), out_fused.shape
    assert jnp.allclose(out_fused, ref, rtol=1e-5, atol=1e-5), \
        "fused kernel mismatch vs reference"

    # Tiled two-pass path (forced, multi-tile) to verify it compiles & matches.
    out_tiled = attention_forward(x, fc1_w, fc1_b, fc2_w, fc2_b,
                                  force_tiled=True, hw_tile=128)
    out_tiled = jax.block_until_ready(out_tiled)
    assert jnp.allclose(out_tiled, ref, rtol=1e-5, atol=1e-5), \
        "tiled kernels mismatch vs reference"

    print("KERNEL_OK")
</pallas_src>

<mosaic_0001>
module attributes {stable_mosaic.version = 11 : i64} {
  func.func @_attn_fused_kernel(%arg0: i32, %arg1: memref<1x32x256xf32, #tpu.memory_space<vmem>>, %arg2: memref<32x4xf32, #tpu.memory_space<vmem>>, %arg3: memref<1x4xf32, #tpu.memory_space<vmem>>, %arg4: memref<32x4xf32, #tpu.memory_space<vmem>>, %arg5: memref<32x1xf32, #tpu.memory_space<vmem>>, %arg6: memref<1x32x256xf32, #tpu.memory_space<vmem>>) attributes {dimension_semantics = [#tpu.dimension_semantics<parallel>], iteration_bounds = array<i64: 2>, scalar_prefetch = 0 : i64, scratch_operands = 0 : i64, tpu.core_type = #tpu.core_type<tc>, window_params = [{transform_indices = @transform_0, window_bounds = array<i64: 1, 32, 256>}, {pipeline_mode = #tpu.pipeline_mode<synchronous>, transform_indices = @transform_1, window_bounds = array<i64: 32, 4>}, {pipeline_mode = #tpu.pipeline_mode<synchronous>, transform_indices = @transform_2, window_bounds = array<i64: 1, 4>}, {pipeline_mode = #tpu.pipeline_mode<synchronous>, transform_indices = @transform_3, window_bounds = array<i64: 32, 4>}, {pipeline_mode = #tpu.pipeline_mode<synchronous>, transform_indices = @transform_4, window_bounds = array<i64: 32, 1>}, {transform_indices = @transform_5, window_bounds = array<i64: 1, 32, 256>}]} {
    %c0 = arith.constant 0 : index
    %c0_0 = arith.constant 0 : index
    %c0_1 = arith.constant 0 : index
    %0 = vector.load %arg1[%c0, %c0_0, %c0_1] : memref<1x32x256xf32, #tpu.memory_space<vmem>>, vector<1x32x256xf32>
    %1 = vector.shape_cast %0 : vector<1x32x256xf32> to vector<32x256xf32>
    %cst = arith.constant dense<0.000000e+00> : vector<32xf32>
    %2 = vector.multi_reduction <add>, %1, %cst [1] : vector<32x256xf32> to vector<32xf32>
    %3 = vector.shape_cast %2 : vector<32xf32> to vector<32x1xf32>
    %cst_2 = arith.constant 3.906250e-03 : f32
    %4 = vector.broadcast %cst_2 : f32 to vector<32x1xf32>
    %5 = arith.mulf %3, %4 : vector<32x1xf32>
    %c0_3 = arith.constant 0 : index
    %c0_4 = arith.constant 0 : index
    %6 = vector.load %arg2[%c0_3, %c0_4] : memref<32x4xf32, #tpu.memory_space<vmem>>, vector<32x4xf32>
    %c0_5 = arith.constant 0 : index
    %c0_6 = arith.constant 0 : index
    %7 = vector.load %arg3[%c0_5, %c0_6] : memref<1x4xf32, #tpu.memory_space<vmem>>, vector<1x4xf32>
    %c0_7 = arith.constant 0 : index
    %c0_8 = arith.constant 0 : index
    %8 = vector.load %arg4[%c0_7, %c0_8] : memref<32x4xf32, #tpu.memory_space<vmem>>, vector<32x4xf32>
    %c0_9 = arith.constant 0 : index
    %c0_10 = arith.constant 0 : index
    %9 = vector.load %arg5[%c0_9, %c0_10] : memref<32x1xf32, #tpu.memory_space<vmem>>, vector<32x1xf32>
    %10 = vector.broadcast %5 : vector<32x1xf32> to vector<32x4xf32>
    %11 = arith.mulf %6, %10 : vector<32x4xf32>
    %cst_11 = arith.constant dense<0.000000e+00> : vector<4xf32>
    %12 = vector.multi_reduction <add>, %11, %cst_11 [0] : vector<32x4xf32> to vector<4xf32>
    %13 = vector.shape_cast %12 : vector<4xf32> to vector<1x4xf32>
    %14 = arith.addf %13, %7 : vector<1x4xf32>
    %cst_12 = arith.constant 0.000000e+00 : f32
    %15 = vector.broadcast %cst_12 : f32 to vector<1x4xf32>
    %16 = arith.maximumf %14, %15 : vector<1x4xf32>
    %17 = vector.broadcast %16 : vector<1x4xf32> to vector<32x4xf32>
    %18 = arith.mulf %8, %17 : vector<32x4xf32>
    %cst_13 = arith.constant dense<0.000000e+00> : vector<32xf32>
    %19 = vector.multi_reduction <add>, %18, %cst_13 [1] : vector<32x4xf32> to vector<32xf32>
    %20 = vector.shape_cast %19 : vector<32xf32> to vector<32x1xf32>
    %21 = arith.addf %20, %9 : vector<32x1xf32>
    %22 = math.absf %21 : vector<32x1xf32>
    %cst_14 = arith.constant 0.000000e+00 : f32
    %23 = vector.broadcast %cst_14 : f32 to vector<32x1xf32>
    %24 = arith.subf %23, %22 : vector<32x1xf32>
    %25 = math.exp %24 : vector<32x1xf32>
    %cst_15 = arith.constant 0.000000e+00 : f32
    %26 = vector.broadcast %cst_15 : f32 to vector<32x1xf32>
    %27 = arith.cmpf oge, %21, %26 : vector<32x1xf32>
    %cst_16 = arith.constant 1.000000e+00 : f32
    %28 = vector.broadcast %cst_16 : f32 to vector<32x1xf32>
    %29 = arith.addf %28, %25 : vector<32x1xf32>
    %cst_17 = arith.constant 1.000000e+00 : f32
    %30 = vector.broadcast %cst_17 : f32 to vector<32x1xf32>
    %31 = arith.divf %30, %29 : vector<32x1xf32>
    %cst_18 = arith.constant 1.000000e+00 : f32
    %32 = vector.broadcast %cst_18 : f32 to vector<32x1xf32>
    %33 = arith.addf %32, %25 : vector<32x1xf32>
    %34 = arith.divf %25, %33 : vector<32x1xf32>
    %35 = arith.select %27, %31, %34 : vector<32x1xi1>, vector<32x1xf32>
    %36 = vector.broadcast %35 : vector<32x1xf32> to vector<32x256xf32>
    %37 = arith.mulf %1, %36 : vector<32x256xf32>
    %c0_19 = arith.constant 0 : index
    %c0_20 = arith.constant 0 : index
    %c0_21 = arith.constant 0 : index
    %38 = vector.load %arg6[%c0_19, %c0_20, %c0_21] : memref<1x32x256xf32, #tpu.memory_space<vmem>>, vector<1x32x256xf32>
    %39 = vector.shape_cast %38 : vector<1x32x256xf32> to vector<32x256xf32>
    %40 = vector.shape_cast %37 : vector<32x256xf32> to vector<1x32x256xf32>
    tpu.vector_store %arg6[%c0_19, %c0_20, %c0_21], %40 {strides = array<i32>} : memref<1x32x256xf32, #tpu.memory_space<vmem>>, vector<1x32x256xf32>,
    return
  }
  func.func @transform_0(%arg0: i32) -> (i32, i32, i32) {
    %c0_i32 = arith.constant 0 : i32
    %c0_i32_0 = arith.constant 0 : i32
    %c0_i32_1 = arith.constant 0 : i32
    return %arg0, %c0_i32, %c0_i32_0 : i32, i32, i32
  }
  func.func @transform_1(%arg0: i32) -> (i32, i32) {
    %c0_i32 = arith.constant 0 : i32
    %c0_i32_0 = arith.constant 0 : i32
    %c0_i32_1 = arith.constant 0 : i32
    return %c0_i32, %c0_i32_0 : i32, i32
  }
  func.func @transform_2(%arg0: i32) -> (i32, i32) {
    %c0_i32 = arith.constant 0 : i32
    %c0_i32_0 = arith.constant 0 : i32
    %c0_i32_1 = arith.constant 0 : i32
    return %c0_i32, %c0_i32_0 : i32, i32
  }
  func.func @transform_3(%arg0: i32) -> (i32, i32) {
    %c0_i32 = arith.constant 0 : i32
    %c0_i32_0 = arith.constant 0 : i32
    %c0_i32_1 = arith.constant 0 : i32
    return %c0_i32, %c0_i32_0 : i32, i32
  }
  func.func @transform_4(%arg0: i32) -> (i32, i32) {
    %c0_i32 = arith.constant 0 : i32
    %c0_i32_0 = arith.constant 0 : i32
    %c0_i32_1 = arith.constant 0 : i32
    return %c0_i32, %c0_i32_0 : i32, i32
  }
  func.func @transform_5(%arg0: i32) -> (i32, i32, i32) {
    %c0_i32 = arith.constant 0 : i32
    %c0_i32_0 = arith.constant 0 : i32
    %c0_i32_1 = arith.constant 0 : i32
    return %arg0, %c0_i32, %c0_i32_0 : i32, i32, i32
  }
}

</mosaic_0001>

<bundles_post_ra>
// kernel: tpu_custom_call.1
= control target key start
LH: loop header
LB: loop body
LE: loop exit
PB: predicated region body
PF: predicated region fallthrough
CT: control target
= control target key end

     0   :  { %10 = vsyncpa [#allocation3], 0  ;;  %s952_s0 = inlined_call_operand.hbm [shape: f32[2,32,256], index: 0, kind: input, shape index: {}]   ;;  %s953_s1 = inlined_call_operand.vmem [shape: f32[32,4], index: 1, kind: input, shape index: {}]   ;;  %s954_s2 = inlined_call_operand.vmem [shape: f32[1,4], index: 2, kind: input, shape index: {}]   ;;  %s955_s3 = inlined_call_operand.vmem [shape: f32[32,4], index: 3, kind: input, shape index: {}]   ;;  %s956_s4 = inlined_call_operand.vmem [shape: f32[32,1], index: 4, kind: input, shape index: {}]   ;;  %s957_s5 = inlined_call_operand.hbm [shape: f32[2,32,256], index: 5, kind: output, shape index: {}]  }
   0x1   :  { %12 = vsyncpa [#allocation3 + $0x1], 0 }
   0x2   :  { %13 = vsyncpa [#allocation4], 0 }
   0x3   :  { %15 = vsyncpa [#allocation4 + $0x1], 0  ;;  %s707_s18 = smov 0   ;;  %s709_s19 = smov 0  }
   0x4   :  { %s711_s20 = smov 0   ;;  %s713_s21 = smov 0  }
   0x5 LB: > { %s728_s22 = sadd.s32 4294967295, %s668_s21   ;;  %s487_s23 = sadd.s32 4294967294, %s668_s21   ;;  %s668_s21 = sphi %s713_s21, %s970_s21   ;;  %s664_s20 = sphi %s711_s20, %s969_s20   ;;  %s660_s19 = sphi %s709_s19, %s968_s19   ;;  %s656_s18 = sphi %s707_s18, %s967_s18  }
   0x6   : > { %s732_s24 = sadd.s32 1, %s668_s21   ;;  %s28_s25 = sadd.s32 1, %s664_s20 }
   0x7   : > { %s25_s26 = ssub.s32 %s668_s21, %s732_s24  ;;  %p35_p0 = scmp.ne.s32.totalorder %s664_s20, %s660_s19 }
   0x8   : > { %p26_p1 = scmp.eq.s32.totalorder %s25_s26, 0  ;;  %p36_p2 = scmp.eq.s32.totalorder %s668_s21, 0 }
   0x9   : > { %p41_p3 = scmp.ne.s32.totalorder %s660_s19, %s656_s18  ;;  %p42_p4 = scmp.eq.s32.totalorder %s728_s22, 0 }
   0xa   : > { %s744_s27 = scalar_select %p26_p1, %s664_s20, %s28_s25  }
   0xb   : > { %p746_p5 = por %p36_p2, %p35_p0  ;;  %p750_p6 = por %p42_p4, %p41_p3 }
   0xc   : > { %p149_p7 = scmp.eq.s32.totalorder %s728_s22, 1  ;;  %p155_p8 = scmp.eq.s32.totalorder %s487_s23, 1 }
   0xd   : > { %p515_p10 = scmp.lt.s32.totalorder %s668_s21, 2  ;;  %s187_s7 = sand.u32 1, %s664_s20  }
   0xe   : > { %p757_p11 = por %p149_p7, %p35_p0  ;;  %p761_p12 = por %p155_p8, %p41_p3 }
   0xf   : > { %s501_s8 = sshll.u32 %s668_s21, 10  ;;  %s490_s9 = sshll.u32 %s187_s7, 6 }
  0x10   : > { %s961_s30 = scalar_select %p757_p11, 1, 0 }
  0x11   : > { %s962_s6 = scalar_select %p761_p12, 1, 0 }
  0x12   : > { %s770_s12 = scalar_lea.hbm %s952_s0, %s501_s8  ;;  %s191_s13 = scalar_lea.vmem [#allocation2], %s490_s9 }
  0x13   : > { %s198_s14 = sshll.u32 %s191_s13, 4  ;;  %p774_p13 = pnand %p515_p10, %p746_p5  ;;  %s778_s14 = int_to_ptr.vmem [resolvable:$true] %s198_s14 }
  0x14   : > { %s780_s16 = scalar_lea.sflag [#allocation3], %s187_s7  ;;  %s572_s17 = scalar_lea.hbm %s770_s12, 1024 }
  0x15   : > { %p573_p0 = scmp.ne.s32.totalorder %s770_s12, %s572_s17  ;;  %p574_p1 = pneg %p774_p13 }
  0x16   : > { %s577_s26 = scalar_lea.hbm %s952_s0, 2048  ;;  %p578_p4 = scmp.lt.u32.totalorder %s770_s12, %s952_s0 }
  0x17   : > { %p575_p2 = pnand %p574_p1, %p573_p0  ;;  %p579_p5 = scmp.lt.u32.totalorder %s577_s26, %s572_s17 }
  0x18   : > { %p581_p8 = scmp.lt.u32.totalorder %s572_s17, %s770_s12 }
  0x19   : > { %p576_p3 = pneg %p575_p2  ;;  %p580_p7 = por %p579_p5, %p578_p4 }
  0x1b   : > { %p582_p10 = por %p581_p8, %p580_p7 }
  0x1d   : > { %p583_p9 = pnand %p582_p10, %p576_p3 }
  0x1f   : > { %586 = shalt.err (!%p583_p9)
}
  0x20   : > { %s587_s7 = scalar_lea.vmem %s778_s14, 1024  ;;  %s670_s9 = smov [#allocation2]  }
  0x21   : > { %p588_p0 = scmp.ne.s32.totalorder %s778_s14, %s587_s7  ;;  %s592_s10 = sshll.u32 %s670_s9, 4  ;;  %s593_s10 = int_to_ptr.vmem [resolvable:$false] %s592_s10 }
  0x22   : > { %s594_s11 = scalar_lea.vmem %s593_s10, 2048  ;;  %p595_p11 = scmp.lt.s32.totalorder %s778_s14, %s593_s10 }
  0x23   : > { %p590_p2 = pnand %p588_p0, %p574_p1  ;;  %p596_p4 = scmp.lt.s32.totalorder %s594_s11, %s587_s7 }
  0x25   : > { %p591_p12 = pneg %p590_p2  ;;  %p597_p5 = por %p596_p4, %p595_p11 }
  0x27   : > { %p598_p7 = pnand %p597_p5, %p591_p12 }
  0x29   : > { %601 = shalt.err (!%p598_p7)
}
  0x2a   : > { %s671_s13 = smov 256   ;;  %s672_s17 = smov 16  }
  0x2b   : > { %510 = dma.hbm_to_vmem [thread:$0]  (!%p774_p13), %s770_s12, 1024, %s778_s14, %s780_s16, %s671_s13, %s671_s13, %s672_s17  }
  0x2c   : > { %p493_p9 = scmp.ge.s32.totalorder %s668_s21, 1  ;;  %p206_p1 = scmp.lt.s32.totalorder %s668_s21, 3 }
  0x2e   : > { %p207_p3 = pnand %p493_p9, %p206_p1 }
  0x2f   : > { %s811_s23 = sand.u32 (!%p207_p3), 1, %s660_s19  }
  0x30   : > { %210 = sbr.rel (%p207_p3) target bundleno = 568 (0x238), region = 40  ;;  %s494_s25 = sshll.u32 (!%p207_p3), %s811_s23, 6 }
  0x31   : > { %s213_s26 = scalar_lea.sflag (!%p207_p3), [#allocation3], %s811_s23  ;;  %s216_s28 = scalar_lea.vmem (!%p207_p3), [#allocation2], %s494_s25 }
  0x37   : > { %647 = dma.done.wait (%p750_p6), %s213_s26, 1024  }
  0x38   : > { %649 = vsyncadd (%p750_p6), %s213_s26, 4294966272  ;;  %v821_v0 = vld [vmem:[%s216_s28] sm:$0xff]  ;;  %v823_v1 = vld [vmem:[%s216_s28 + $0x8] sm:$0xff]  ;;  %vm284_vm0 = vcmask 31744   ;;  %v300_v38 = vlaneseq  ;;  %v673_v60 = vmov 0   ;;  %s242_s26 = scalar_lea.vmem [#allocation5], %s494_s25 }
  0x39   : > { %v825_v2 = vld [vmem:[%s216_s28 + $0x20] sm:$0xff]  ;;  %v251_v3 = vadd.f32 %v823_v1, %v821_v0  ;;  %v829_v4 = vld [vmem:[%s216_s28 + $0x28] sm:$0xff]  ;;  %v831_v5 = vld [vmem:[%s216_s28 + $0x10] sm:$0xff]  ;;  %555 = vset.pattern.permute.xlu1 %v673_v60  ;;  %554 = vset.pattern.permute.xlu0 %v673_v60  ;;  %s502_s29 = sshll.u32 %s728_s22, 10  ;;  %s401_s22 = scalar_lea.sflag [#allocation4], %s811_s23 }
  0x3a   : > { %v833_v6 = vld [vmem:[%s216_s28 + $0x18] sm:$0xff]  ;;  %v257_v7 = vadd.f32 %v829_v4, %v825_v2  ;;  %v837_v8 = vld [vmem:[%s216_s28 + $0x30] sm:$0xff]  ;;  %v267_v15 = vld [vmem:[%s953_s1] sm:$0xff]  ;;  %v301_v41 = vshrl.u32 %v300_v38, 7  ;;  %s906_s14 = scalar_lea.hbm %s957_s5, %s502_s29  ;;  %p964_p11 = scmp.ne.s32.totalorder %s961_s30, 0 }
  0x3b   : > { %v839_v9 = vld [vmem:[%s216_s28 + $0x38] sm:$0xff]  ;;  %252 = vadd.xlane.f32.xlu0 %v251_v3  ;;  %v254_v10 = vadd.f32 %v833_v6, %v831_v5  ;;  %v269_v17 = vld [vmem:[%s953_s1 + $0x10] sm:$0xff]  ;;  %v268_v18 = vld [vmem:[%s953_s1 + $0x8] sm:$0xff]  ;;  %s414_s28 = sshll.u32 %s242_s26, 4  ;;  %s674_s16 = smov [#allocation5]   ;;  %s901_s28 = int_to_ptr.vmem [resolvable:$true] %s414_s28 }
  0x3c   : > { %258 = vadd.xlane.f32.xlu1 %v257_v7  ;;  %v260_v11 = vadd.f32 %v839_v9, %v837_v8  ;;  %v270_v22 = vld [vmem:[%s953_s1 + $0x18] sm:$0xff]  ;;  %v271_v42 = vld [vmem:[%s954_s2] sm:$0x1]  ;;  %v302_v45 = vsub.s32 0, %v301_v41  ;;  %v273_v47 = vld [vmem:[%s955_s3 + $0x8] sm:$0xff]  ;;  %s602_s15 = scalar_lea.vmem %s901_s28, 1024 }
  0x3d   : > { %v272_v48 = vld [vmem:[%s955_s3] sm:$0xff]  ;;  %v275_v50 = vld [vmem:[%s955_s3 + $0x18] sm:$0xff]  ;;  %v274_v51 = vld [vmem:[%s955_s3 + $0x10] sm:$0xff]  ;;  %p603_p6 = scmp.ne.s32.totalorder %s901_s28, %s602_s15  ;;  %s606_s8 = sshll.u32 %s674_s16, 4  ;;  %s607_s8 = int_to_ptr.vmem [resolvable:$false] %s606_s8 }
  0x3e   : > { %v277_v61 = vld [vmem:[%s956_s4 + $0x8] sm:$0xff]  ;;  %v276_v62 = vld [vmem:[%s956_s4] sm:$0xff]  ;;  %s608_s7 = scalar_lea.vmem %s607_s8, 2048  ;;  %p609_p8 = scmp.lt.s32.totalorder %s901_s28, %s607_s8 }
  0x3f   : > { %255 = vadd.xlane.f32.xlu0 %v254_v10  ;;  %p604_p12 = pnand %p603_p6, %p964_p11  ;;  %p610_p10 = scmp.lt.s32.totalorder %s608_s7, %s602_s15 }
  0x40   : > { %261 = vadd.xlane.f32.xlu1 %v260_v11  ;;  %v279_v11 = vld [vmem:[%s956_s4 + $0x18] sm:$0xff] }
  0x41   : > { %p605_p13 = pneg %p604_p12  ;;  %p611_p0 = por %p610_p10, %p609_p8 }
  0x43   : > { %p612_p2 = pnand %p611_p0, %p605_p13 }
  0xc8   : > { %v253_v12 = vpop.xlane.xlu0 %252 }
  0xc9   : > { %v263_v13 = vmul.f32 0.00390625, %v253_v12  ;;  %v259_v14 = vpop.xlane.xlu1 %258  ;;  %v278_v12 = vld [vmem:[%s956_s4 + $0x10] sm:$0xff] }
  0xca   : > { %v265_v16 = vmul.f32 0.00390625, %v259_v14 }
  0xcb   : > { %v280_v20 = vmul.f32 %v267_v15, %v263_v13 }
  0xcc   : > { %v256_v19 = vpop.xlane.xlu0 %255  ;;  %v282_v25 = vmul.f32 %v269_v17, %v265_v16 }
  0xcd   : > { %v264_v21 = vmul.f32 0.00390625, %v256_v19  ;;  %v262_v23 = vpop.xlane.xlu1 %261  ;;  %v285_v28 = vsel %vm284_vm0, %v280_v20, 0.0 }
  0xce   : > { %v266_v24 = vmul.f32 0.00390625, %v262_v23  ;;  %v288_v31 = vsel %vm284_vm0, %v282_v25, 0.0 }
  0xcf   : > { %v281_v26 = vmul.f32 %v268_v18, %v264_v21 }
  0xd0   : > { %v283_v27 = vmul.f32 %v270_v22, %v266_v24 }
  0xd1   : > { %v286_v29 = vsel %vm284_vm0, %v281_v26, 0.0 }
  0xd2   : > { %v287_v30 = vadd.f32 %v286_v29, %v285_v28  ;;  %v290_v32 = vsel %vm284_vm0, %v283_v27, 0.0 }
  0xd4   : > { %v289_v33 = vadd.f32 %v288_v31, %v287_v30 }
  0xd6   : > { %v291_v34 = vadd.f32 %v290_v32, %v289_v33 }
  0xd8   : > { %v292_v35 = vrot.slane %v291_v34, 4 }
  0xda   : > { %v293_v36 = vadd.f32 %v292_v35, %v291_v34 }
  0xdc   : > { %v294_v37 = vrot.slane %v293_v36, 2 }
  0xde   : > { %v295_v39 = vadd.f32 %v294_v37, %v293_v36 }
  0xe0   : > { %v296_v40 = vrot.slane %v295_v39, 1 }
  0xe2   : > { %v297_v43 = vadd.f32 %v296_v40, %v295_v39 }
  0xe4   : > { %v298_v44 = vadd.f32 %v297_v43, %v271_v42 }
  0xe6   : > { %v299_v46 = vmax.f32 %v298_v44, 0.0 }
  0xe8   : > { %v303_v49 = vrot.slane %v299_v46, %v302_v45 }
  0xea   : > { %v305_v52 = vmul.f32 %v303_v49, %v273_v47  ;;  %v304_v53 = vmul.f32 %v303_v49, %v272_v48  ;;  %v307_v56 = vmul.f32 %v303_v49, %v275_v50  ;;  %v306_v57 = vmul.f32 %v303_v49, %v274_v51 }
  0xec   : > { %v311_v54 = vsel %vm284_vm0, %v305_v52, 0.0  ;;  %v308_v55 = vsel %vm284_vm0, %v304_v53, 0.0  ;;  %v317_v58 = vsel %vm284_vm0, %v307_v56, 0.0  ;;  %v314_v59 = vsel %vm284_vm0, %v306_v57, 0.0 }
  0xed   : > { %312 = vadd.xlane.f32.xlu1 %v311_v54  ;;  %309 = vadd.xlane.f32.xlu0 %v308_v55 }
  0xf1   : > { %318 = vadd.xlane.f32.xlu1 %v317_v58  ;;  %315 = vadd.xlane.f32.xlu0 %v314_v59 }
 0x17a   : > { %v313_v63 = vpop.xlane.xlu1 %312  ;;  %v310_v3 = vpop.xlane.xlu0 %309 }
 0x17b   : > { %v321_v7 = vadd.f32 %v313_v63, %v277_v61  ;;  %v320_v10 = vadd.f32 %v310_v3, %v276_v62 }
 0x17d   : > { %v325_v13 = vand.u32 2147483647, %v321_v7  ;;  %v324_v14 = vand.u32 2147483647, %v320_v10  ;;  %vm341_vm1 = vcmp.ge.f32.partialorder %v321_v7, 0.0  ;;  %vm340_vm2 = vcmp.ge.f32.partialorder %v320_v10, 0.0 }
 0x17e   : > { %v319_v15 = vpop.xlane.xlu1 %318  ;;  %v316_v16 = vpop.xlane.xlu0 %315 }
 0x17f   : > { %v329_v17 = vsub.f32 0.0, %v325_v13  ;;  %v328_v18 = vsub.f32 0.0, %v324_v14  ;;  %v323_v19 = vadd.f32 %v319_v15, %v279_v11  ;;  %v322_v20 = vadd.f32 %v316_v16, %v278_v12 }
 0x181   : > { %v334_v21 = vmul.f32 1.442695, %v329_v17  ;;  %v332_v22 = vmul.f32 1.442695, %v328_v18  ;;  %v327_v23 = vand.u32 2147483647, %v323_v19 }
 0x182   : > { %v326_v24 = vand.u32 2147483647, %v322_v20  ;;  %vm342_vm3 = vcmp.ge.f32.partialorder %v322_v20, 0.0  ;;  %vm343_vm4 = vcmp.ge.f32.partialorder %v323_v19, 0.0 }
 0x183   : > { %556 = vpow2.f32 %v334_v21  ;;  %v331_v25 = vsub.f32 0.0, %v327_v23 }
 0x184   : > { %558 = vpow2.f32 %v332_v22  ;;  %v330_v26 = vsub.f32 0.0, %v326_v24 }
 0x185   : > { %v338_v27 = vmul.f32 1.442695, %v331_v25 }
 0x186   : > { %v336_v28 = vmul.f32 1.442695, %v330_v26 }
 0x187   : > { %560 = vpow2.f32 %v338_v27 }
 0x188   : > { %562 = vpow2.f32 %v336_v28 }
 0x18d   : > { %v557_v29 = vpop.eup %556 }
 0x18e   : > { %v559_v30 = vpop.eup %558  ;;  %v345_v31 = vadd.f32 1.0, %v557_v29 }
 0x18f   : > { %v344_v32 = vadd.f32 1.0, %v559_v30 }
 0x190   : > { %564 = vrcp.f32 %v345_v31 }
 0x191   : > { %v561_v33 = vpop.eup %560  ;;  %566 = vrcp.f32 %v344_v32 }
 0x192   : > { %v563_v34 = vpop.eup %562  ;;  %v347_v35 = vadd.f32 1.0, %v561_v33 }
 0x193   : > { %v346_v36 = vadd.f32 1.0, %v563_v34 }
 0x194   : > { %568 = vrcp.f32 %v347_v35 }
 0x195   : > { %570 = vrcp.f32 %v346_v36 }
 0x19a   : > { %v565_v37 = vpop.eup %564 }
 0x19b   : > { %v567_v38 = vpop.eup %566  ;;  %v357_v39 = vmul.f32 %v565_v37, %v557_v29 }
 0x19c   : > { %v356_v40 = vmul.f32 %v567_v38, %v559_v30 }
 0x19d   : > { %v361_v41 = vsel %vm341_vm1, %v565_v37, %v357_v39 }
 0x19e   : > { %v569_v42 = vpop.eup %568  ;;  %371 = vperm.xlu1 %555, %v361_v41   ;;  %v360_v43 = vsel %vm340_vm2, %v567_v38, %v356_v40 }
 0x19f   : > { %v571_v44 = vpop.eup %570  ;;  %366 = vperm.xlu0 %554, %v360_v43   ;;  %v359_v47 = vmul.f32 %v569_v42, %v561_v33 }
 0x1a0   : > { %v358_v45 = vmul.f32 %v571_v44, %v563_v34 }
 0x1a1   : > { %v363_v48 = vsel %vm343_vm4, %v569_v42, %v359_v47 }
 0x1a2   : > { %v362_v46 = vsel %vm342_vm3, %v571_v44, %v358_v45 }
 0x1a3   : > { %376 = vperm.xlu1 %555, %v362_v46  }
 0x1a7   : > { %381 = vperm.xlu1 %555, %v363_v48  }
 0x21d   : > { %v372_v49 = vpop.permute.xlu1 %371 }
 0x21e   : > { %v386_v50 = vmul.f32 %v372_v49, %v831_v5  ;;  %v387_v51 = vmul.f32 %v372_v49, %v833_v6  ;;  %v367_v52 = vpop.permute.xlu0 %366 }
 0x21f   : > { %v384_v53 = vmul.f32 %v367_v52, %v821_v0  ;;  %v385_v54 = vmul.f32 %v367_v52, %v823_v1 }
 0x220   : > { %394 = vst [vmem:[%s242_s26 + $0x10] sm:$0xff] %v386_v50  ;;  %395 = vst [vmem:[%s242_s26 + $0x18] sm:$0xff] %v387_v51 }
 0x221   : > { %392 = vst [vmem:[%s242_s26] sm:$0xff] %v384_v53  ;;  %393 = vst [vmem:[%s242_s26 + $0x8] sm:$0xff] %v385_v54 }
 0x222   : > { %v377_v55 = vpop.permute.xlu1 %376 }
 0x223   : > { %v388_v56 = vmul.f32 %v377_v55, %v825_v2  ;;  %v389_v5 = vmul.f32 %v377_v55, %v829_v4 }
 0x225   : > { %396 = vst [vmem:[%s242_s26 + $0x20] sm:$0xff] %v388_v56  ;;  %397 = vst [vmem:[%s242_s26 + $0x28] sm:$0xff] %v389_v5 }
 0x226   : > { %v382_v0 = vpop.permute.xlu1 %381 }
 0x227   : > { %v390_v1 = vmul.f32 %v382_v0, %v837_v8  ;;  %v391_v2 = vmul.f32 %v382_v0, %v839_v9 }
 0x229   : > { %398 = vst [vmem:[%s242_s26 + $0x30] sm:$0xff] %v390_v1  ;;  %399 = vst [vmem:[%s242_s26 + $0x38] sm:$0xff] %v391_v2 }
 0x22a   : > { %615 = shalt.err (!%p612_p2)
}
 0x22b   : > { %s616_s9 = scalar_lea.hbm %s906_s14, 1024  ;;  %s620_s13 = scalar_lea.hbm %s957_s5, 2048 }
 0x22c   : > { %p617_p4 = scmp.ne.s32.totalorder %s906_s14, %s616_s9  ;;  %p621_p9 = scmp.lt.u32.totalorder %s906_s14, %s957_s5 }
 0x22d   : > { %p622_p1 = scmp.lt.u32.totalorder %s620_s13, %s616_s9  ;;  %p624_p6 = scmp.lt.u32.totalorder %s616_s9, %s906_s14 }
 0x22e   : > { %p618_p5 = pnand %p617_p4, %p964_p11 }
 0x22f   : > { %p623_p3 = por %p622_p1, %p621_p9 }
 0x230   : > { %p619_p7 = pneg %p618_p5 }
 0x231   : > { %p625_p12 = por %p624_p6, %p623_p3 }
 0x233   : > { %p626_p13 = pnand %p625_p12, %p619_p7 }
 0x235   : > { %629 = shalt.err (!%p626_p13)
}
 0x236   : > { %s675_s29 = smov 256   ;;  %s676_s25 = smov 16  }
 0x237   : > { %505 = dma.vmem_to_hbm [thread:$0]  (%p964_p11), %s901_s28, 1024, %s906_s14, %s401_s22, %s675_s29, %s675_s29, %s676_s25  }
 0x238 PF: > { %s429_s12 = sand.u32 1, %s656_s18   ;;  %p965_p8 = scmp.ne.s32.totalorder %s962_s6, 0 }
 0x239   : > { %p966_p10 = scmp.ge.s32.totalorder %s668_s21, 2  ;;  %s430_s15 = scalar_lea.sflag [#allocation4], %s429_s12 }
 0x23b   : > { %p512_p0 = pnand %p966_p10, %p965_p8 }
 0x23d   : > { %651 = dma.done.wait (!%p512_p0), %s430_s15, 1024  }
 0x23e   : > { %653 = vsyncadd (!%p512_p0), %s430_s15, 4294966272  ;;  %p18_p2 = scmp.ge.s32.totalorder %s732_s24, 4   ;;  %s967_s18 = smov %s660_s19 }
 0x23f   : > { %s968_s19 = smov %s664_s20  ;;  %s969_s20 = smov %s744_s27 }
 0x240   : > { %s970_s21 = smov %s732_s24  ;;  %20 = sbr.rel (!%p18_p2) target bundleno = 5 (0x5), region = 85 }
 0x247   :  { %435 = vsyncpa [#allocation3], 1 }
 0x248   :  { %437 = vsyncpa [#allocation3 + $0x1], 1 }
 0x249   :  { %438 = vsyncpa [#allocation4], 1 }
 0x24a   :  { %440 = vsyncpa [#allocation4 + $0x1], 1 }

</bundles_post_ra>
